<compile_context>
chip_gen: v7x
topology: tpu7x:2x2x1
jax: 0.10.0
libtpu: 0.0.40
codegen_flags: <defaults>
</compile_context>

<pallas_src>
import functools

import jax
import jax.numpy as jnp
from jax.experimental import pallas as pl
from jax.experimental.pallas import tpu as pltpu


def _deconv_k2s2_kernel(x_ref, w_ref, b_ref, o_ref):
    # x_ref: (tm, Cin)   w_ref: (Cin, 8*Cout)   b_ref: (1, 8*Cout) f32
    # o_ref: (tm, 8*Cout)
    acc = jnp.dot(
        x_ref[...],
        w_ref[...],
        preferred_element_type=jnp.float32,
        # f32 PyTorch-conv numerics.  HBM-bound kernel, so the multi-pass
        # decomposition is free filler; revisit only if Cin/Cout grow enough
        # to make this MXU-bound (review item 10).
        precision=jax.lax.Precision.HIGHEST,
    )
    o_ref[...] = (acc + b_ref[...]).astype(o_ref.dtype)


def _pick_row_tile(n_rows, cin, m, *, vmem_budget_bytes=8 * 1024 * 1024,
                   tm_max=2048, min_tiles=8):
    """Largest multiple-of-8 row tile that divides n_rows, fits the VMEM
    budget (double-buffered x + out blocks) and leaves >= min_tiles steps."""
    per_row = (cin + m) * 4 * 2                     # f32, 2 pipeline buffers
    cap = min(tm_max,
              max(8, vmem_budget_bytes // per_row),
              max(8, n_rows // min_tiles))
    cap = max(8, min(cap, n_rows))
    cap = max(8, (cap // 8) * 8)
    t = cap
    while t >= 8:                                   # <= 256 trace-time iters
        if n_rows % t == 0:
            return t, False                         # exact tiling, no padding
        t -= 8
    return cap, True                                # ragged -> pad fallback


@functools.partial(jax.jit, static_argnames=("out_dtype",))
def single_deconv3d_block(x, weight, bias, *, out_dtype=None):
    """ConvTranspose3d(k=2, s=2, p=0) forward.

    x:      (B, Cin, D, H, W)
    weight: (Cin, Cout, 2, 2, 2)   (PyTorch ConvTranspose3d layout)
    bias:   (Cout,)
    returns (B, Cout, 2D, 2H, 2W) in out_dtype (default: x.dtype)
    """
    B, Cin, D, H, W = x.shape
    Cin_w, Cout, KD, KH, KW = weight.shape
    assert Cin_w == Cin and (KD, KH, KW) == (2, 2, 2)
    out_dtype = x.dtype if out_dtype is None else out_dtype

    N = B * D * H * W            # flattened input voxels (matmul rows)
    M = 8 * Cout                 # fused (co, kd, kh, kw) output columns

    # --- wrapper-side layout plumbing (no compute) --------------------------
    # x -> (N, Cin) channels-last (the only input-sized extra HBM pass; ~1/16
    # of total bytes -- see header note on why the orientation is kept).
    x_mat = jnp.transpose(x, (0, 2, 3, 4, 1)).reshape(N, Cin)
    # weight -> (Cin, M) with columns ordered (co, kd, kh, kw): pure reshape.
    w_mat = weight.reshape(Cin, M)
    # bias repeated 8x per channel to match the (co, kd, kh, kw) column order.
    b_row = jnp.repeat(bias.astype(jnp.float32), 8).reshape(1, M)

    # --- row tiling ----------------------------------------------------------
    tm, needs_pad = _pick_row_tile(N, Cin, M)
    if needs_pad:
        n_tiles = pl.cdiv(N, tm)
        n_pad = n_tiles * tm
        x_mat = jnp.pad(x_mat, ((0, n_pad - N), (0, 0)))
    else:
        n_tiles = N // tm
        n_pad = N

    y = pl.pallas_call(
        _deconv_k2s2_kernel,
        out_shape=jax.ShapeDtypeStruct((n_pad, M), out_dtype),
        grid=(n_tiles,),
        in_specs=[
            pl.BlockSpec((tm, Cin), lambda i: (i, 0)),   # activations (tiled)
            pl.BlockSpec((Cin, M), lambda i: (0, 0)),    # weight (resident)
            pl.BlockSpec((1, M), lambda i: (0, 0)),      # bias   (resident)
        ],
        out_specs=pl.BlockSpec((tm, M), lambda i: (i, 0)),
        compiler_params=pltpu.CompilerParams(
            dimension_semantics=("parallel",),           # shard tiles over TCs
            vmem_limit_bytes=32 * 1024 * 1024,
        ),
    )(x_mat, w_mat, b_row)

    # --- interleave back to NCDHW (pure layout; see TODO in header) ---------
    # y rows are (b, d, h, w); columns (co, kd, kh, kw) with kw fastest, so the
    # transpose moves contiguous 8-byte kw-pairs.
    y = y[:N].reshape(B, D, H, W, Cout, 2, 2, 2)
    y = jnp.transpose(y, (0, 4, 1, 5, 2, 6, 3, 7))       # (B,Cout,D,2,H,2,W,2)
    return y.reshape(B, Cout, 2 * D, 2 * H, 2 * W)


def single_deconv3d_block_ref(x, weight, bias):
    """Independent pure-JAX reference for ConvTranspose3d(k=2, s=2, p=0)."""
    y = jnp.einsum(
        "bcdhw,cokln->bodkhlwn", x, weight,
        precision=jax.lax.Precision.HIGHEST,
    )
    B, _, D, H, W = x.shape
    Cout = weight.shape[1]
    y = y.reshape(B, Cout, 2 * D, 2 * H, 2 * W)
    return y + bias[None, :, None, None, None]


if __name__ == "__main__":
    key = jax.random.PRNGKey(0)
    k_x, k_w, k_b = jax.random.split(key, 3)

    # Small shapes consistent with the module: batch=2, in_planes=32,
    # out_planes=16, spatial 8^3  ->  output (2, 16, 16, 16, 16).
    B, Cin, Cout = 2, 32, 16
    D = H = W = 8

    x = jax.random.normal(k_x, (B, Cin, D, H, W), dtype=jnp.float32)
    weight = jax.random.normal(k_w, (Cin, Cout, 2, 2, 2), dtype=jnp.float32) * 0.1
    bias = jax.random.normal(k_b, (Cout,), dtype=jnp.float32) * 0.1

    out = single_deconv3d_block(x, weight, bias)
    out = jax.block_until_ready(out)

    ref = single_deconv3d_block_ref(x, weight, bias)
    assert out.shape == (B, Cout, 2 * D, 2 * H, 2 * W), out.shape
    assert jnp.allclose(out, ref, atol=1e-4, rtol=1e-4), float(
        jnp.max(jnp.abs(out - ref))
    )

    print("KERNEL_OK")
</pallas_src>

<mosaic_0001>
module attributes {stable_mosaic.version = 11 : i64} {
  func.func @_deconv_k2s2_kernel(%arg0: i32, %arg1: memref<128x32xf32, #tpu.memory_space<vmem>>, %arg2: memref<32x128xf32, #tpu.memory_space<vmem>>, %arg3: memref<1x128xf32, #tpu.memory_space<vmem>>, %arg4: memref<128x128xf32, #tpu.memory_space<vmem>>) attributes {dimension_semantics = [#tpu.dimension_semantics<parallel>], iteration_bounds = array<i64: 8>, scalar_prefetch = 0 : i64, scratch_operands = 0 : i64, tpu.core_type = #tpu.core_type<tc>, window_params = [{transform_indices = @transform_0, window_bounds = array<i64: 128, 32>}, {pipeline_mode = #tpu.pipeline_mode<synchronous>, transform_indices = @transform_1, window_bounds = array<i64: 32, 128>}, {pipeline_mode = #tpu.pipeline_mode<synchronous>, transform_indices = @transform_2, window_bounds = array<i64: 1, 128>}, {transform_indices = @transform_3, window_bounds = array<i64: 128, 128>}]} {
    %c0 = arith.constant 0 : index
    %c0_0 = arith.constant 0 : index
    %0 = vector.load %arg1[%c0, %c0_0] : memref<128x32xf32, #tpu.memory_space<vmem>>, vector<128x32xf32>
    %c0_1 = arith.constant 0 : index
    %c0_2 = arith.constant 0 : index
    %1 = vector.load %arg2[%c0_1, %c0_2] : memref<32x128xf32, #tpu.memory_space<vmem>>, vector<32x128xf32>
    %cst = arith.constant dense<0.000000e+00> : vector<128x128xf32>
    %2 = tpu.matmul %0, %1, %cst {dimension_numbers = #tpu.dot_dimension_numbers<[1], [0], [0], [1], [0, 0, 1, 1], [], []>, precision = #tpu.contract_precision<fp32>} : vector<128x32xf32>, vector<32x128xf32>, vector<128x128xf32> -> vector<128x128xf32>
    %c0_3 = arith.constant 0 : index
    %c0_4 = arith.constant 0 : index
    %3 = vector.load %arg3[%c0_3, %c0_4] : memref<1x128xf32, #tpu.memory_space<vmem>>, vector<1x128xf32>
    %4 = vector.broadcast %3 : vector<1x128xf32> to vector<128x128xf32>
    %5 = arith.addf %2, %4 : vector<128x128xf32>
    %c0_5 = arith.constant 0 : index
    %c0_6 = arith.constant 0 : index
    %6 = vector.load %arg4[%c0_5, %c0_6] : memref<128x128xf32, #tpu.memory_space<vmem>>, vector<128x128xf32>
    tpu.vector_store %arg4[%c0_5, %c0_6], %5 {strides = array<i32>} : memref<128x128xf32, #tpu.memory_space<vmem>>, vector<128x128xf32>,
    return
  }
  func.func @transform_0(%arg0: i32) -> (i32, i32) {
    %c0_i32 = arith.constant 0 : i32
    %c0_i32_0 = arith.constant 0 : i32
    return %arg0, %c0_i32 : i32, i32
  }
  func.func @transform_1(%arg0: i32) -> (i32, i32) {
    %c0_i32 = arith.constant 0 : i32
    %c0_i32_0 = arith.constant 0 : i32
    %c0_i32_1 = arith.constant 0 : i32
    return %c0_i32, %c0_i32_0 : i32, i32
  }
  func.func @transform_2(%arg0: i32) -> (i32, i32) {
    %c0_i32 = arith.constant 0 : i32
    %c0_i32_0 = arith.constant 0 : i32
    %c0_i32_1 = arith.constant 0 : i32
    return %c0_i32, %c0_i32_0 : i32, i32
  }
  func.func @transform_3(%arg0: i32) -> (i32, i32) {
    %c0_i32 = arith.constant 0 : i32
    %c0_i32_0 = arith.constant 0 : i32
    return %arg0, %c0_i32 : i32, i32
  }
}

</mosaic_0001>

<bundles_post_ra>
// kernel: single_deconv3d_block.1
= control target key start
LH: loop header
LB: loop body
LE: loop exit
PB: predicated region body
PF: predicated region fallthrough
CT: control target
= control target key end

     0   :  { %8 = vsyncpa [#allocation3], 0  ;;  %s2503_s0 = inlined_call_operand.hbm [shape: f32[1024,32], index: 0, kind: input, shape index: {}]   ;;  %s2504_s1 = inlined_call_operand.vmem [shape: f32[32,128], index: 1, kind: input, shape index: {}]   ;;  %s2505_s2 = inlined_call_operand.vmem [shape: f32[1,128], index: 2, kind: input, shape index: {}]   ;;  %s2506_s3 = inlined_call_operand.vmem [shape: f32[1024,128], index: 3, kind: output, shape index: {}]  }
   0x1   :  { %10 = vsyncpa [#allocation3 + $0x1], 0  ;;  %s2083_s12 = smov 0   ;;  %s2085_s13 = smov 0  }
   0x2   :  { %s2087_s14 = smov 0   ;;  %s2089_s15 = smov 0  }
   0x3 LB: > { %s1482_s16 = sadd.s32 4294967295, %s2058_s15   ;;  %s2103_s17 = sadd.s32 1, %s2058_s15   ;;  %s2058_s15 = sphi %s2089_s15, %s2513_s15   ;;  %s2054_s14 = sphi %s2087_s14, %s2512_s14   ;;  %s2050_s13 = sphi %s2085_s13, %s2511_s13   ;;  %s2046_s12 = sphi %s2083_s12, %s2510_s12  }
   0x4   : > { %s20_s18 = ssub.s32 %s2058_s15, %s2103_s17  ;;  %s23_s19 = sadd.s32 1, %s2054_s14 }
   0x5   : > { %p21_p0 = scmp.eq.s32.totalorder %s20_s18, 0  ;;  %p30_p1 = scmp.ne.s32.totalorder %s2054_s14, %s2050_s13 }
   0x6   : > { %p31_p2 = scmp.eq.s32.totalorder %s2058_s15, 0  ;;  %p36_p3 = scmp.ne.s32.totalorder %s2050_s13, %s2046_s12 }
   0x7   : > { %s2113_s20 = scalar_select %p21_p0, %s2054_s14, %s23_s19  }
   0x8   : > { %p32_p4 = por %p31_p2, %p30_p1  ;;  %p37_p5 = scmp.eq.s32.totalorder %s1482_s16, 0 }
   0x9   : > { %p1959_p6 = scmp.lt.s32.totalorder %s2058_s15, 8  ;;  %s134_s22 = sand.u32 1, %s2054_s14  }
   0xa   : > { %p2118_p7 = por %p37_p5, %p36_p3  ;;  %s1486_s23 = sshll.u32 %s134_s22, 7 }
   0xb   : > { %s1496_s24 = sshll.u32 %s2058_s15, 11  ;;  %s138_s28 = scalar_lea.vmem [#allocation2], %s1486_s23 }
   0xc   : > { %s2127_s27 = scalar_lea.hbm %s2503_s0, %s1496_s24  ;;  %s145_s29 = sshll.u32 %s138_s28, 4  ;;  %s2129_s29 = int_to_ptr.vmem [resolvable:$true] %s145_s29 }
   0xd   : > { %p2131_p8 = pnand %p1959_p6, %p32_p4  ;;  %s2136_s4 = scalar_lea.sflag [#allocation3], %s134_s22 }
   0xe   : > { %s1994_s5 = scalar_lea.hbm %s2127_s27, 2048  ;;  %s1999_s8 = scalar_lea.hbm %s2503_s0, 16384 }
   0xf   : > { %p1995_p10 = scmp.ne.s32.totalorder %s2127_s27, %s1994_s5  ;;  %p1996_p11 = pneg %p2131_p8 }
  0x10   : > { %p2000_p0 = scmp.lt.u32.totalorder %s2127_s27, %s2503_s0  ;;  %p2001_p1 = scmp.lt.u32.totalorder %s1999_s8, %s1994_s5 }
  0x11   : > { %p1997_p12 = pnand %p1996_p11, %p1995_p10  ;;  %p2003_p3 = scmp.lt.u32.totalorder %s1994_s5, %s2127_s27 }
  0x12   : > { %p2002_p2 = por %p2001_p1, %p2000_p0 }
  0x13   : > { %p1998_p13 = pneg %p1997_p12 }
  0x14   : > { %p2004_p4 = por %p2003_p3, %p2002_p2 }
  0x16   : > { %p2005_p5 = pnand %p2004_p4, %p1998_p13 }
  0x18   : > { %2008 = shalt.err (!%p2005_p5)
}
  0x19   : > { %s2009_s11 = scalar_lea.vmem %s2129_s29, 2048  ;;  %s2060_s12 = smov [#allocation2]  }
  0x1a   : > { %p2010_p6 = scmp.ne.s32.totalorder %s2129_s29, %s2009_s11  ;;  %s2014_s18 = sshll.u32 %s2060_s12, 4  ;;  %s2015_s18 = int_to_ptr.vmem [resolvable:$false] %s2014_s18 }
  0x1b   : > { %s2016_s19 = scalar_lea.vmem %s2015_s18, 4096  ;;  %p2017_p9 = scmp.lt.s32.totalorder %s2129_s29, %s2015_s18 }
  0x1c   : > { %p2012_p10 = pnand %p2010_p6, %p1996_p11  ;;  %p2018_p0 = scmp.lt.s32.totalorder %s2016_s19, %s2009_s11 }
  0x1e   : > { %p2013_p12 = pneg %p2012_p10  ;;  %p2019_p1 = por %p2018_p0, %p2017_p9 }
  0x20   : > { %p2020_p2 = pnand %p2019_p1, %p2013_p12 }
  0x22   : > { %2023 = shalt.err (!%p2020_p2)
}
  0x23   : > { %s2061_s22 = smov 128   ;;  %s2062_s23 = smov 8  }
  0x24   : > { %1958 = dma.hbm_to_vmem [thread:$0]  (!%p2131_p8), %s2127_s27, 2048, %s2129_s29, %s2136_s4, %s2061_s22, %s2061_s22, %s2062_s23  }
  0x25   : > { %p153_p11 = scmp.lt.s32.totalorder %s2058_s15, 9  ;;  %p2509_p13 = scmp.ge.s32.totalorder %s2058_s15, 1 }
  0x27   : > { %p154_p3 = pnand %p2509_p13, %p153_p11 }
  0x28   : > { %s159_s24 = sand.u32 (!%p154_p3), 1, %s2050_s13  }
  0x29   : > { %157 = sbr.rel (%p154_p3) target bundleno = 373 (0x175), region = 32  ;;  %s1490_s25 = sshll.u32 (!%p154_p3), %s159_s24, 7 }
  0x2a   : > { %s160_s26 = scalar_lea.sflag (!%p154_p3), [#allocation3], %s159_s24  ;;  %s2168_s28 = scalar_lea.vmem (!%p154_p3), [#allocation2], %s1490_s25 }
  0x30   : > { %2041 = dma.done.wait (%p2118_p7), %s160_s26, 2048  }
  0x31   : > { %2043 = vsyncadd (%p2118_p7), %s160_s26, 4294965248  ;;  %vm220_vm0 = vcmask 261120   ;;  %v209_v0 = vld [vmem:[%s2504_s1] sm:$0xff]  ;;  %v210_v1 = vld [vmem:[%s2504_s1 + $0x8] sm:$0xff]  ;;  %s1491_s8 = sshll.u32 %s1482_s16, 4 }
  0x32   : > { %v2183_v2 = vld [vmem:[%s2504_s1 + $0x10] sm:$0xff]  ;;  %v270_v3 = vand.u32 4294901760, %v209_v0  ;;  %v273_v4 = vand.u32 4294901760, %v210_v1  ;;  %v2188_v5 = vld [vmem:[%s2504_s1 + $0x18] sm:$0xff]  ;;  %v193_v7 = vld [vmem:[%s2168_s28] sm:$0xff]  ;;  %p188_p7 = scmp.lt.s32.totalorder %s1491_s8, 127 }
  0x33   : > { %v276_v6 = vand.u32 4294901760, %v2183_v2  ;;  %v194_v8 = vld [vmem:[%s2168_s28 + $0x8] sm:$0xff]  ;;  %v279_v9 = vand.u32 4294901760, %v2188_v5  ;;  %v222_v10 = vsel %vm220_vm0, %v193_v7, 0  ;;  %v195_v12 = vld [vmem:[%s2168_s28 + $0x10] sm:$0xff]  ;;  %v196_v13 = vld [vmem:[%s2168_s28 + $0x18] sm:$0xff] }
  0x34   : > { %v225_v11 = vsel %vm220_vm0, %v194_v8, 0  ;;  %v2198_v14 = vpack.c.bf16 %v273_v4, %v270_v3  ;;  %v2200_v15 = vand.u32 4294901760, %v222_v10  ;;  %v2204_v17 = vsub.f32 %v209_v0, %v270_v3  ;;  %v197_v18 = vld [vmem:[%s2168_s28 + $0x20] sm:$0xff]  ;;  %v198_v19 = vld [vmem:[%s2168_s28 + $0x28] sm:$0xff]  ;;  %v199_v40 = vld [vmem:[%s2168_s28 + $0x30] sm:$0xff]  ;;  %s2515_s8 = smov (!%p188_p7, %s1491_s8), 127 }
  0x35   : > { %v2202_v16 = vand.u32 4294901760, %v225_v11  ;;  %v2212_v20 = vpack.c.bf16 %v279_v9, %v276_v6  ;;  %v2214_v21 = vsub.f32 %v210_v1, %v273_v4  ;;  %v228_v22 = vsel %vm220_vm0, %v195_v12, 0  ;;  %v200_v49 = vld [vmem:[%s2168_s28 + $0x38] sm:$0xff]  ;;  %v201_v50 = vld [vmem:[%s2168_s28 + $0x40] sm:$0xff]  ;;  %v202_v59 = vld [vmem:[%s2168_s28 + $0x48] sm:$0xff]  ;;  %s1492_s11 = sshll.u32 %s2515_s8, 3 }
  0x36   : > { %v231_v23 = vsel %vm220_vm0, %v196_v13, 0  ;;  %1810 = vmatprep.subr.bf16.mxu1 %v2198_v14  ;;  %1834 = vmatprep.subr.bf16.mxu0 %v2198_v14  ;;  %v2221_v24 = vsub.f32 %v222_v10, %v2200_v15  ;;  %v501_v26 = vand.u32 4294901760, %v2204_v17  ;;  %v2227_v27 = vand.u32 4294901760, %v228_v22  ;;  %v203_v12 = vld [vmem:[%s2168_s28 + $0x50] sm:$0xff]  ;;  %s2457_s19 = scalar_lea.vmem %s2506_s3, %s1492_s11 }
  0x37   : > { %v2224_v25 = vsub.f32 %v225_v11, %v2202_v16  ;;  %1812 = vmatpush3.bf16.msra.mxu1 %v2198_v14  ;;  %1836 = vmatpush3.bf16.msra.mxu0 %v2198_v14  ;;  %v508_v28 = vand.u32 4294901760, %v2214_v21  ;;  %v2232_v29 = vand.u32 4294901760, %v231_v23  ;;  %v234_v30 = vsel %vm220_vm0, %v197_v18, 0 }
  0x38   : > { %v237_v31 = vsel %vm220_vm0, %v198_v19, 0  ;;  %1814 = vmatprep.subr.bf16.mxu1 %v2212_v20  ;;  %1838 = vmatprep.subr.bf16.mxu0 %v2212_v20  ;;  %v340_v32 = vand.u32 4294901760, %v2221_v24  ;;  %v502_v34 = vsub.f32 %v2204_v17, %v501_v26  ;;  %v2242_v35 = vsub.f32 %v228_v22, %v2227_v27 }
  0x39   : > { %v350_v33 = vand.u32 4294901760, %v2224_v25  ;;  %v509_v36 = vsub.f32 %v2214_v21, %v508_v28  ;;  %v1841_v37 = vpack.c.bf16 %v508_v28, %v501_v26  ;;  %v2246_v38 = vsub.f32 %v231_v23, %v2232_v29  ;;  %v204_v28 = vld [vmem:[%s2168_s28 + $0x58] sm:$0xff] }
  0x3a   : > { %v2248_v39 = vand.u32 4294901760, %v234_v30  ;;  %v341_v41 = vsub.f32 %v2221_v24, %v340_v32  ;;  %1721 = vmatprep.mubr.f32.mxu0 %v340_v32  ;;  %v503_v43 = vand.u32 4294901760, %v502_v34  ;;  %v360_v44 = vand.u32 4294901760, %v2242_v35 }
  0x3b   : > { %v351_v42 = vsub.f32 %v2224_v25, %v350_v33  ;;  %1816 = vmatpush3.bf16.msra.mxu1 %v2212_v20  ;;  %1840 = vmatpush3.bf16.msra.mxu0 %v2212_v20  ;;  %v510_v45 = vand.u32 4294901760, %v509_v36  ;;  %v370_v46 = vand.u32 4294901760, %v2246_v38  ;;  %v2260_v48 = vand.u32 4294901760, %v237_v31 }
  0x3c   : > { %v2258_v47 = vsub.f32 %v234_v30, %v2248_v39  ;;  %v342_v51 = vand.u32 4294901760, %v341_v41  ;;  %1842 = vmatprep.subr.bf16.mxu0 %v1841_v37  ;;  %v361_v53 = vsub.f32 %v2242_v35, %v360_v44  ;;  %v240_v54 = vsel %vm220_vm0, %v199_v40, 0 }
  0x3d   : > { %v352_v52 = vand.u32 4294901760, %v351_v42  ;;  %v1817_v55 = vpack.c.bf16 %v510_v45, %v503_v43  ;;  %v371_v56 = vsub.f32 %v2246_v38, %v370_v46  ;;  %v2269_v58 = vsub.f32 %v237_v31, %v2260_v48  ;;  %v205_v43 = vld [vmem:[%s2168_s28 + $0x60] sm:$0xff] }
  0x3e   : > { %v380_v57 = vand.u32 4294901760, %v2258_v47  ;;  %1625 = vmatprep.mubr.f32.mxu1 %v342_v51  ;;  %1722 = vmatmul.mubr.f32.vlgmr.msra.gmra.mrb[0].mxu0 %v350_v33  ;;  %v362_v60 = vand.u32 4294901760, %v361_v53  ;;  %v2272_v61 = vand.u32 4294901760, %v240_v54  ;;  %v243_v62 = vsel %vm220_vm0, %v200_v49, 0 }
  0x3f   : > { %v246_v63 = vsel %vm220_vm0, %v201_v50, 0  ;;  %1626 = vmatmul.mubr.f32.vlgmr.msra.gmra.mrb[0].mxu1 %v352_v52  ;;  %1818 = vmatprep.subr.bf16.mxu1 %v1817_v55  ;;  %v372_v0 = vand.u32 4294901760, %v371_v56  ;;  %v390_v3 = vand.u32 4294901760, %v2269_v58  ;;  %v2278_v4 = vand.u32 4294901760, %v243_v62  ;;  %v206_v50 = vld [vmem:[%s2168_s28 + $0x68] sm:$0xff] }
  0x40   : > { %v381_v1 = vsub.f32 %v2258_v47, %v380_v57  ;;  %1820 = vmatpush3.bf16.msra.mxu1 %v1817_v55  ;;  %1628 = vmatprep.mubr.f32.mxu1 %v362_v60  ;;  %v2281_v7 = vsub.f32 %v240_v54, %v2272_v61  ;;  %v2283_v8 = vand.u32 4294901760, %v246_v63  ;;  %v249_v10 = vsel %vm220_vm0, %v202_v59, 0  ;;  %v207_v55 = vld [vmem:[%s2168_s28 + $0x70] sm:$0xff] }
  0x41   : > { %v2289_v11 = vsub.f32 %v2183_v2, %v276_v6  ;;  %1724 = vmatprep.mubr.f32.mxu0 %v360_v44  ;;  %1844 = vmatpush3.bf16.msra.mxu0 %v1841_v37  ;;  %v391_v18 = vsub.f32 %v2269_v58, %v390_v3  ;;  %v2294_v19 = vsub.f32 %v243_v62, %v2278_v4  ;;  %v2296_v22 = vand.u32 4294901760, %v249_v10  ;;  %v208_v62 = vld [vmem:[%s2168_s28 + $0x78] sm:$0xff] }
  0x42   : > { %v382_v13 = vand.u32 4294901760, %v381_v1  ;;  %1725 = vmatmul.mubr.f32.gmra.mrb[2].mxu0 %v370_v46  ;;  %v400_v23 = vand.u32 4294901760, %v2281_v7  ;;  %v2300_v26 = vsub.f32 %v246_v63, %v2283_v8  ;;  %v2306_v6 = vsub.f32 %v2188_v5, %v279_v9 }
  0x43   : > { %v515_v2 = vand.u32 4294901760, %v2289_v11  ;;  %1629 = vmatmul.mubr.f32.gmra.mrb[2].mxu1 %v372_v0  ;;  %1727 = vmatprep.mubr.f32.mxu0 %v380_v57  ;;  %v392_v30 = vand.u32 4294901760, %v391_v18  ;;  %v410_v31 = vand.u32 4294901760, %v2294_v19  ;;  %v2311_v32 = vsub.f32 %v249_v10, %v2296_v22 }
  0x44   : > { %v252_v33 = vsel %vm220_vm0, %v203_v12, 0  ;;  %1631 = vmatprep.mubr.f32.mxu1 %v382_v13  ;;  %v401_v34 = vsub.f32 %v2281_v7, %v400_v23  ;;  %v420_v36 = vand.u32 4294901760, %v2300_v26  ;;  %v522_v9 = vand.u32 4294901760, %v2306_v6 }
  0x45   : > { %v516_v5 = vsub.f32 %v2289_v11, %v515_v2  ;;  %v411_v37 = vsub.f32 %v2294_v19, %v410_v31  ;;  %v430_v40 = vand.u32 4294901760, %v2311_v32  ;;  %v2320_v41 = vand.u32 4294901760, %v252_v33 }
  0x46   : > { %v255_v42 = vsel %vm220_vm0, %v204_v28, 0  ;;  %1728 = vmatmul.mubr.f32.gmra.mrb[4].mxu0 %v390_v3  ;;  %v402_v44 = vand.u32 4294901760, %v401_v34  ;;  %v421_v45 = vsub.f32 %v2300_v26, %v420_v36  ;;  %v523_v49 = vsub.f32 %v2306_v6, %v522_v9 }
  0x47   : > { %v517_v46 = vand.u32 4294901760, %v516_v5  ;;  %1632 = vmatmul.mubr.f32.gmra.mrb[4].mxu1 %v392_v30  ;;  %1730 = vmatprep.mubr.f32.mxu0 %v400_v23  ;;  %v412_v51 = vand.u32 4294901760, %v411_v37  ;;  %v431_v52 = vsub.f32 %v2311_v32, %v430_v40  ;;  %v1845_v53 = vpack.c.bf16 %v522_v9, %v515_v2 }
  0x48   : > { %v2329_v54 = vsub.f32 %v252_v33, %v2320_v41  ;;  %1634 = vmatprep.mubr.f32.mxu1 %v402_v44  ;;  %v422_v56 = vand.u32 4294901760, %v421_v45  ;;  %v524_v57 = vand.u32 4294901760, %v523_v49  ;;  %v2332_v59 = vand.u32 4294901760, %v255_v42 }
  0x49   : > { %v258_v60 = vsel %vm220_vm0, %v205_v43, 0  ;;  %v432_v63 = vand.u32 4294901760, %v431_v52  ;;  %1846 = vmatprep.subr.bf16.mxu0 %v1845_v53  ;;  %v261_v3 = vsel %vm220_vm0, %v206_v50, 0  ;;  %v264_v18 = vsel %vm220_vm0, %v207_v55, 0 }
  0x4a   : > { %v440_v0 = vand.u32 4294901760, %v2329_v54  ;;  %v2337_v1 = vand.u32 4294901760, %v258_v60  ;;  %1731 = vmatmul.mubr.f32.gmra.mrb[6].mxu0 %v410_v31  ;;  %v1821_v10 = vpack.c.bf16 %v524_v57, %v517_v46  ;;  %v2341_v12 = vsub.f32 %v255_v42, %v2332_v59 }
  0x4b   : > { %v2343_v13 = vand.u32 4294901760, %v261_v3  ;;  %1635 = vmatmul.mubr.f32.gmra.mrb[6].mxu1 %v412_v51  ;;  %1733 = vmatprep.mubr.f32.mxu0 %v420_v36  ;;  %v2350_v28 = vand.u32 4294901760, %v264_v18  ;;  %v267_v30 = vsel %vm220_vm0, %v208_v62, 0  ;;  %v1825_v36 = vpack.c.bf16 %v2214_v21, %v2204_v17 }
  0x4c   : > { %v441_v23 = vsub.f32 %v2329_v54, %v440_v0  ;;  %v2348_v2 = vsub.f32 %v258_v60, %v2337_v1  ;;  %1637 = vmatprep.mubr.f32.mxu1 %v422_v56  ;;  %1822 = vmatprep.subr.bf16.mxu1 %v1821_v10  ;;  %v450_v31 = vand.u32 4294901760, %v2341_v12  ;;  %v2357_v34 = vand.u32 4294901760, %v267_v30 }
  0x4d   : > { %v2355_v33 = vsub.f32 %v261_v3, %v2343_v13  ;;  %1824 = vmatpush3.bf16.msra.mxu1 %v1821_v10  ;;  %1848 = vmatpush3.bf16.msra.mxu0 %v1845_v53  ;;  %v2363_v37 = vsub.f32 %v264_v18, %v2350_v28  ;;  %v1829_v56 = vpack.c.bf16 %v2306_v6, %v2289_v11 }
  0x4e   : > { %v442_v5 = vand.u32 4294901760, %v441_v23  ;;  %v460_v9 = vand.u32 4294901760, %v2348_v2  ;;  %1734 = vmatmul.mubr.f32.gmra.mrb[8].mxu0 %v430_v40  ;;  %v451_v42 = vsub.f32 %v2341_v12, %v450_v31  ;;  %v2368_v44 = vsub.f32 %v267_v30, %v2357_v34  ;;  %1826 = vmatprep.subr.bf16.mxu1 %v1825_v36 }
  0x4f   : > { %v470_v43 = vand.u32 4294901760, %v2355_v33  ;;  %1638 = vmatmul.mubr.f32.gmra.mrb[8].mxu1 %v432_v63  ;;  %1736 = vmatprep.mubr.f32.mxu0 %v440_v0  ;;  %v480_v21 = vand.u32 4294901760, %v2363_v37 }
  0x50   : > { %v461_v17 = vsub.f32 %v2348_v2, %v460_v9  ;;  %1640 = vmatprep.mubr.f32.mxu1 %v442_v5  ;;  %v452_v45 = vand.u32 4294901760, %v451_v42  ;;  %v490_v40 = vand.u32 4294901760, %v2368_v44  ;;  %1850 = vmatprep.subr.bf16.mxu0 %v2198_v14 }
  0x51   : > { %v471_v46 = vsub.f32 %v2355_v33, %v470_v43  ;;  %v481_v50 = vsub.f32 %v2363_v37, %v480_v21 }
  0x52   : > { %v462_v49 = vand.u32 4294901760, %v461_v17  ;;  %1737 = vmatmul.mubr.f32.gmra.mrb[10].mxu0 %v450_v31  ;;  %v491_v52 = vsub.f32 %v2368_v44, %v490_v40 }
  0x53   : > { %1641 = vmatmul.mubr.f32.gmra.mrb[10].mxu1 %v452_v45  ;;  %1739 = vmatprep.mubr.f32.mxu0 %v460_v9  ;;  %v472_v51 = vand.u32 4294901760, %v471_v46  ;;  %v482_v53 = vand.u32 4294901760, %v481_v50 }
  0x54   : > { %1643 = vmatprep.mubr.f32.mxu1 %v462_v49  ;;  %v492_v55 = vand.u32 4294901760, %v491_v52 }
  0x56   : > { %1740 = vmatmul.mubr.f32.gmra.mrb[12].mxu0 %v470_v43 }
  0x57   : > { %1644 = vmatmul.mubr.f32.gmra.mrb[12].mxu1 %v472_v51  ;;  %1742 = vmatprep.mubr.f32.mxu0 %v480_v21 }
  0x58   : > { %1646 = vmatprep.mubr.f32.mxu1 %v482_v53 }
  0x5a   : > { %1743 = vmatmul.mubr.f32.gmra.mrb[14].mxu0 %v490_v40 }
  0x5b   : > { %1647 = vmatmul.mubr.f32.gmra.mrb[14].mxu1 %v492_v55  ;;  %1753 = vmatprep.mubr.f32.mxu0 %v2200_v15 }
  0x5c   : > { %1657 = vmatprep.mubr.f32.mxu1 %v2200_v15 }
  0x5e   : > { %1754 = vmatmul.mubr.f32.vlgmr.msra.gmra.mrb[0].mxu0 %v2202_v16 }
  0x5f   : > { %1658 = vmatmul.mubr.f32.vlgmr.msra.gmra.mrb[0].mxu1 %v2202_v16  ;;  %1756 = vmatprep.mubr.f32.mxu0 %v2227_v27 }
  0x60   : > { %1828 = vmatpush3.bf16.msra.mxu1 %v1825_v36  ;;  %1660 = vmatprep.mubr.f32.mxu1 %v2227_v27 }
  0x61   : > { %1852 = vmatpush3.bf16.msra.mxu0 %v2198_v14  ;;  %1830 = vmatprep.subr.bf16.mxu1 %v1829_v56  ;;  %v2451_v14 = vld [vmem:[%s2505_s2] ss:$0 sm:$0xff] }
  0x62   : > { %1757 = vmatmul.mubr.f32.gmra.mrb[2].mxu0 %v2232_v29  ;;  %1854 = vmatprep.subr.bf16.mxu0 %v2212_v20 }
  0x63   : > { %1661 = vmatmul.mubr.f32.gmra.mrb[2].mxu1 %v2232_v29  ;;  %1759 = vmatprep.mubr.f32.mxu0 %v2248_v39 }
  0x64   : > { %1663 = vmatprep.mubr.f32.mxu1 %v2248_v39  ;;  %1832 = vmatpush3.bf16.msra.mxu1 %v1829_v56 }
  0x65   : > { %1856 = vmatpush3.bf16.msra.mxu0 %v2212_v20 }
  0x66   : > { %1760 = vmatmul.mubr.f32.gmra.mrb[4].mxu0 %v2260_v48 }
  0x67   : > { %1664 = vmatmul.mubr.f32.gmra.mrb[4].mxu1 %v2260_v48  ;;  %1762 = vmatprep.mubr.f32.mxu0 %v2272_v61 }
  0x68   : > { %1666 = vmatprep.mubr.f32.mxu1 %v2272_v61 }
  0x6a   : > { %1763 = vmatmul.mubr.f32.gmra.mrb[6].mxu0 %v2278_v4 }
  0x6b   : > { %1667 = vmatmul.mubr.f32.gmra.mrb[6].mxu1 %v2278_v4  ;;  %1765 = vmatprep.mubr.f32.mxu0 %v2283_v8 }
  0x6c   : > { %1669 = vmatprep.mubr.f32.mxu1 %v2283_v8 }
  0x6e   : > { %1766 = vmatmul.mubr.f32.gmra.mrb[8].mxu0 %v2296_v22 }
  0x6f   : > { %1670 = vmatmul.mubr.f32.gmra.mrb[8].mxu1 %v2296_v22  ;;  %1768 = vmatprep.mubr.f32.mxu0 %v2320_v41 }
  0x70   : > { %1672 = vmatprep.mubr.f32.mxu1 %v2320_v41 }
  0x72   : > { %1769 = vmatmul.mubr.f32.gmra.mrb[10].mxu0 %v2332_v59 }
  0x73   : > { %1673 = vmatmul.mubr.f32.gmra.mrb[10].mxu1 %v2332_v59  ;;  %1771 = vmatprep.mubr.f32.mxu0 %v2337_v1 }
  0x74   : > { %1675 = vmatprep.mubr.f32.mxu1 %v2337_v1 }
  0x76   : > { %1772 = vmatmul.mubr.f32.gmra.mrb[12].mxu0 %v2343_v13 }
  0x77   : > { %1676 = vmatmul.mubr.f32.gmra.mrb[12].mxu1 %v2343_v13  ;;  %1774 = vmatprep.mubr.f32.mxu0 %v2350_v28 }
  0x78   : > { %1678 = vmatprep.mubr.f32.mxu1 %v2350_v28 }
  0x7a   : > { %1775 = vmatmul.mubr.f32.gmra.mrb[14].mxu0 %v2357_v34 }
  0x7b   : > { %1679 = vmatmul.mubr.f32.gmra.mrb[14].mxu1 %v2357_v34  ;;  %1785 = vmatprep.mubr.f32.mxu0 %v2200_v15 }
  0x7c   : > { %1689 = vmatprep.mubr.f32.mxu1 %v2221_v24 }
  0x7e   : > { %1786 = vmatmul.mubr.f32.vlgmr.msra.gmra.mrb[0].mxu0 %v2202_v16 }
  0x7f   : > { %1690 = vmatmul.mubr.f32.vlgmr.msra.gmra.mrb[0].mxu1 %v2224_v25  ;;  %1788 = vmatprep.mubr.f32.mxu0 %v2227_v27 }
  0x80   : > { %1692 = vmatprep.mubr.f32.mxu1 %v2242_v35 }
  0x82   : > { %1789 = vmatmul.mubr.f32.gmra.mrb[2].mxu0 %v2232_v29 }
  0x83   : > { %1693 = vmatmul.mubr.f32.gmra.mrb[2].mxu1 %v2246_v38  ;;  %1791 = vmatprep.mubr.f32.mxu0 %v2248_v39 }
  0x84   : > { %1695 = vmatprep.mubr.f32.mxu1 %v2258_v47 }
  0x86   : > { %1792 = vmatmul.mubr.f32.gmra.mrb[4].mxu0 %v2260_v48 }
  0x87   : > { %1696 = vmatmul.mubr.f32.gmra.mrb[4].mxu1 %v2269_v58  ;;  %1794 = vmatprep.mubr.f32.mxu0 %v2272_v61 }
  0x88   : > { %1698 = vmatprep.mubr.f32.mxu1 %v2281_v7 }
  0x8a   : > { %1795 = vmatmul.mubr.f32.gmra.mrb[6].mxu0 %v2278_v4 }
  0x8b   : > { %1699 = vmatmul.mubr.f32.gmra.mrb[6].mxu1 %v2294_v19  ;;  %1797 = vmatprep.mubr.f32.mxu0 %v2283_v8 }
  0x8c   : > { %1701 = vmatprep.mubr.f32.mxu1 %v2300_v26 }
  0x8e   : > { %1798 = vmatmul.mubr.f32.gmra.mrb[8].mxu0 %v2296_v22 }
  0x8f   : > { %1702 = vmatmul.mubr.f32.gmra.mrb[8].mxu1 %v2311_v32  ;;  %1800 = vmatprep.mubr.f32.mxu0 %v2320_v41 }
  0x90   : > { %1704 = vmatprep.mubr.f32.mxu1 %v2329_v54 }
  0x92   : > { %1801 = vmatmul.mubr.f32.gmra.mrb[10].mxu0 %v2332_v59 }
  0x93   : > { %1705 = vmatmul.mubr.f32.gmra.mrb[10].mxu1 %v2341_v12  ;;  %1803 = vmatprep.mubr.f32.mxu0 %v2337_v1 }
  0x94   : > { %1707 = vmatprep.mubr.f32.mxu1 %v2348_v2 }
  0x96   : > { %1804 = vmatmul.mubr.f32.gmra.mrb[12].mxu0 %v2343_v13 }
  0x97   : > { %1708 = vmatmul.mubr.f32.gmra.mrb[12].mxu1 %v2355_v33  ;;  %1806 = vmatprep.mubr.f32.mxu0 %v2350_v28 }
  0x98   : > { %1710 = vmatprep.mubr.f32.mxu1 %v2363_v37 }
  0x9a   : > { %1807 = vmatmul.mubr.f32.gmra.mrb[14].mxu0 %v2357_v34 }
  0x9b   : > { %1711 = vmatmul.mubr.f32.gmra.mrb[14].mxu1 %v2368_v44 }
 0x151   : > { %v1787_v15 = vpop.f32.mrb[0].mxu0 }
 0x152   : > { %v1691_v16 = vpop.f32.mrb[0].mxu1  ;;  %v1305_v20 = vpop.f32.mrb[1].mxu0 }
 0x153   : > { %v1857_v24 = vadd.f32 %v1691_v16, %v2451_v14  ;;  %v755_v25 = vpop.f32.mrb[1].mxu1 }
 0x154   : > { %v1859_v27 = vadd.f32 %v2451_v14, %v755_v25 }
 0x155   : > { %v1858_v29 = vadd.f32 %v1857_v24, %v1787_v15  ;;  %v1790_v35 = vpop.f32.mrb[2].mxu0 }
 0x156   : > { %v1860_v38 = vadd.f32 %v1859_v27, %v1305_v20  ;;  %v1694_v39 = vpop.f32.mrb[2].mxu1  ;;  %v1317_v47 = vpop.f32.mrb[3].mxu0 }
 0x157   : > { %1400 = vst [vmem:[%s2457_s19 + $0x8] sm:$0xff] %v1858_v29  ;;  %v1861_v48 = vadd.f32 %v1694_v39, %v2451_v14  ;;  %v769_v58 = vpop.f32.mrb[3].mxu1 }
 0x158   : > { %1399 = vst [vmem:[%s2457_s19] sm:$0xff] %v1860_v38  ;;  %v1863_v61 = vadd.f32 %v2451_v14, %v769_v58 }
 0x159   : > { %v1862_v4 = vadd.f32 %v1861_v48, %v1790_v35  ;;  %v1793_v7 = vpop.f32.mrb[4].mxu0 }
 0x15a   : > { %v1864_v8 = vadd.f32 %v1863_v61, %v1317_v47  ;;  %v1697_v11 = vpop.f32.mrb[4].mxu1  ;;  %v1329_v19 = vpop.f32.mrb[5].mxu0 }
 0x15b   : > { %1402 = vst [vmem:[%s2457_s19 + $0x18] sm:$0xff] %v1862_v4  ;;  %v1865_v22 = vadd.f32 %v1697_v11, %v2451_v14  ;;  %v783_v26 = vpop.f32.mrb[5].mxu1 }
 0x15c   : > { %1401 = vst [vmem:[%s2457_s19 + $0x10] sm:$0xff] %v1864_v8  ;;  %v1867_v6 = vadd.f32 %v2451_v14, %v783_v26 }
 0x15d   : > { %v1866_v32 = vadd.f32 %v1865_v22, %v1793_v7  ;;  %v1796_v41 = vpop.f32.mrb[6].mxu0 }
 0x15e   : > { %v1868_v54 = vadd.f32 %v1867_v6, %v1329_v19  ;;  %v1700_v57 = vpop.f32.mrb[6].mxu1  ;;  %v1341_v59 = vpop.f32.mrb[7].mxu0 }
 0x15f   : > { %1404 = vst [vmem:[%s2457_s19 + $0x28] sm:$0xff] %v1866_v32  ;;  %v1869_v60 = vadd.f32 %v1700_v57, %v2451_v14  ;;  %v797_v62 = vpop.f32.mrb[7].mxu1 }
 0x160   : > { %1403 = vst [vmem:[%s2457_s19 + $0x20] sm:$0xff] %v1868_v54  ;;  %v1871_v63 = vadd.f32 %v2451_v14, %v797_v62 }
 0x161   : > { %v1870_v0 = vadd.f32 %v1869_v60, %v1796_v41  ;;  %v1799_v1 = vpop.f32.mrb[8].mxu0 }
 0x162   : > { %v1872_v3 = vadd.f32 %v1871_v63, %v1341_v59  ;;  %v1703_v10 = vpop.f32.mrb[8].mxu1  ;;  %v1353_v12 = vpop.f32.mrb[9].mxu0 }
 0x163   : > { %1406 = vst [vmem:[%s2457_s19 + $0x38] sm:$0xff] %v1870_v0  ;;  %v1873_v13 = vadd.f32 %v1703_v10, %v2451_v14  ;;  %v811_v18 = vpop.f32.mrb[9].mxu1 }
 0x164   : > { %1405 = vst [vmem:[%s2457_s19 + $0x30] sm:$0xff] %v1872_v3  ;;  %v1875_v23 = vadd.f32 %v2451_v14, %v811_v18 }
 0x165   : > { %v1874_v2 = vadd.f32 %v1873_v13, %v1799_v1  ;;  %v1802_v28 = vpop.f32.mrb[10].mxu0 }
 0x166   : > { %v1876_v30 = vadd.f32 %v1875_v23, %v1353_v12  ;;  %v1706_v31 = vpop.f32.mrb[10].mxu1  ;;  %v1365_v33 = vpop.f32.mrb[11].mxu0 }
 0x167   : > { %1408 = vst [vmem:[%s2457_s19 + $0x48] sm:$0xff] %v1874_v2  ;;  %v1877_v34 = vadd.f32 %v1706_v31, %v2451_v14  ;;  %v825_v36 = vpop.f32.mrb[11].mxu1 }
 0x168   : > { %1407 = vst [vmem:[%s2457_s19 + $0x40] sm:$0xff] %v1876_v30  ;;  %v1879_v5 = vadd.f32 %v2451_v14, %v825_v36 }
 0x169   : > { %v1878_v9 = vadd.f32 %v1877_v34, %v1802_v28  ;;  %v1805_v37 = vpop.f32.mrb[12].mxu0 }
 0x16a   : > { %v1880_v42 = vadd.f32 %v1879_v5, %v1365_v33  ;;  %v1709_v43 = vpop.f32.mrb[12].mxu1  ;;  %v1377_v44 = vpop.f32.mrb[13].mxu0 }
 0x16b   : > { %1410 = vst [vmem:[%s2457_s19 + $0x58] sm:$0xff] %v1878_v9  ;;  %v1881_v17 = vadd.f32 %v1709_v43, %v2451_v14  ;;  %v839_v21 = vpop.f32.mrb[13].mxu1 }
 0x16c   : > { %1409 = vst [vmem:[%s2457_s19 + $0x50] sm:$0xff] %v1880_v42  ;;  %v1883_v45 = vadd.f32 %v2451_v14, %v839_v21 }
 0x16d   : > { %v1882_v46 = vadd.f32 %v1881_v17, %v1805_v37  ;;  %v1808_v40 = vpop.f32.mrb[14].mxu0 }
 0x16e   : > { %v1884_v49 = vadd.f32 %v1883_v45, %v1377_v44  ;;  %v1712_v50 = vpop.f32.mrb[14].mxu1  ;;  %v1389_v51 = vpop.f32.mrb[15].mxu0 }
 0x16f   : > { %1412 = vst [vmem:[%s2457_s19 + $0x68] sm:$0xff] %v1882_v46  ;;  %v1885_v52 = vadd.f32 %v1712_v50, %v2451_v14  ;;  %v853_v53 = vpop.f32.mrb[15].mxu1 }
 0x170   : > { %1411 = vst [vmem:[%s2457_s19 + $0x60] sm:$0xff] %v1884_v49  ;;  %v1887_v55 = vadd.f32 %v2451_v14, %v853_v53 }
 0x171   : > { %v1886_v56 = vadd.f32 %v1885_v52, %v1808_v40 }
 0x172   : > { %v1888_v15 = vadd.f32 %v1887_v55, %v1389_v51 }
 0x173   : > { %1414 = vst [vmem:[%s2457_s19 + $0x78] sm:$0xff] %v1886_v56 }
 0x174   : > { %1413 = vst [vmem:[%s2457_s19 + $0x70] sm:$0xff] %v1888_v15 }
 0x175 PF: > { %p13_p8 = scmp.ge.s32.totalorder %s2103_s17, 10   ;;  %s2510_s12 = smov %s2050_s13 }
 0x176   : > { %s2511_s13 = smov %s2054_s14  ;;  %s2512_s14 = smov %s2113_s20 }
 0x177   : > { %s2513_s15 = smov %s2103_s17  ;;  %15 = sbr.rel (!%p13_p8) target bundleno = 3 (0x3), region = 72 }
 0x17e   :  { %1437 = vsyncpa [#allocation3], 1 }
 0x17f   :  { %1439 = vsyncpa [#allocation3 + $0x1], 1 }

</bundles_post_ra>
